<compile_context>
chip_gen: v5e
topology: v5e:2x2
jax: 0.10.0
libtpu: 0.0.40
codegen_flags: <defaults>
</compile_context>

<pallas_src>
import jax
import jax.numpy as jnp
from jax.experimental import pallas as pl
from jax.experimental.pallas import tpu as pltpu

DROP_P = 0.2
LANE = 128
SUBLANE = 8
ROW_TILE = 256          # A_hat row-tile for large graphs


def _round_up(v, m):
    return ((v + m - 1) // m) * m


def _vmem_limit_bytes(*block_bytes):
    # everything gridded is double-buffered by the pipeline; add headroom, clamp
    # to stay under v7x's 64 MiB physical VMEM.
    est = 2 * int(sum(block_bytes)) + (2 << 20)
    return int(min(max(est, 16 << 20), 64 << 20))


# --------------------------------------------------------------------------
# Stage 1: per A_hat row-tile i
#   xw = x @ W1                          (tile-invariant; recomputed per tile --
#                                         cheap vs the a-matmul; TODO(synk): hoist
#                                         into its own row-tiled kernel if In is huge)
#   h  = a_tile @ xw + b1
#   h  = relu(dropout_mask * h)          (scale commutes with relu)
#   hw = h @ [W_mu | W_lv]               (fused heads, lane-dense output)
# --------------------------------------------------------------------------
def _gcn_stage1_kernel(a_ref, x_ref, w1_ref, b1_ref, mask_ref, wcat_ref, hw_ref):
    xw = jnp.dot(x_ref[...], w1_ref[...], preferred_element_type=jnp.float32)
    h = jnp.dot(a_ref[...], xw.astype(jnp.bfloat16),
                preferred_element_type=jnp.float32) + b1_ref[...]
    h = jnp.maximum(h * mask_ref[...], 0.0)
    hw_ref[...] = jnp.dot(h.astype(jnp.bfloat16), wcat_ref[...],
                          preferred_element_type=jnp.float32).astype(hw_ref.dtype)


# --------------------------------------------------------------------------
# Stage 2: per A_hat row-tile i
#   out = a_tile @ HW + [b_mu | b_lv]    -> one (TN, 128) lane-dense slab
# --------------------------------------------------------------------------
def _gcn_stage2_kernel(a_ref, hw_ref, bcat_ref, out_ref):
    out_ref[...] = (jnp.dot(a_ref[...], hw_ref[...],
                            preferred_element_type=jnp.float32) + bcat_ref[...])


def build_normalized_adjacency(edge_index, num_nodes):
    """D^{-1/2} (A + I) D^{-1/2}, PyG gcn_norm semantics (add_remaining_self_loops:
    pre-existing self-loops are replaced by weight-1 self-loops, not doubled)."""
    src, dst = edge_index[0], edge_index[1]
    not_self = (src != dst).astype(jnp.float32)
    a = jnp.zeros((num_nodes, num_nodes), jnp.float32)
    a = a.at[dst, src].add(not_self)
    a = a + jnp.eye(num_nodes, dtype=jnp.float32)
    deg = a.sum(axis=1)
    d_inv_sqrt = jnp.where(deg > 0, jax.lax.rsqrt(deg), 0.0)
    return d_inv_sqrt[:, None] * a * d_inv_sqrt[None, :]


def _glorot(key, shape):
    lim = (6.0 / (shape[0] + shape[1])) ** 0.5
    return jax.random.uniform(key, shape, jnp.float32, -lim, lim)


def init_vgae_params(key, in_channels, out_channels):
    mid_channels = min((in_channels + out_channels) // 2, 2 * out_channels)
    k1, k2, k3 = jax.random.split(key, 3)
    params = dict(
        w1=_glorot(k1, (in_channels, mid_channels)),
        b1=jnp.zeros((1, mid_channels), jnp.float32),
        w_mu=_glorot(k2, (mid_channels, out_channels)),
        b_mu=jnp.zeros((1, out_channels), jnp.float32),
        w_lv=_glorot(k3, (mid_channels, out_channels)),
        b_lv=jnp.zeros((1, out_channels), jnp.float32),
    )
    return params, mid_channels


def vgae_encoder_forward(params, x, edge_index, dropout_rng):
    n, in_ch = x.shape
    mid = params["w1"].shape[1]
    out_ch = params["w_mu"].shape[1]

    # ---- padded (lane-dense) sizes ----
    inp = _round_up(in_ch, LANE)
    midp = _round_up(mid, LANE)
    headp = _round_up(2 * out_ch, LANE)     # fused mu|logvar head width
    np_ = _round_up(n, SUBLANE)
    if np_ > ROW_TILE:
        np_ = _round_up(n, ROW_TILE)
        tn = ROW_TILE
    else:
        tn = np_
    tiles = np_ // tn

    # ---- build + pad operands (A_hat and matmul operands in bf16) ----
    a_hat = build_normalized_adjacency(edge_index, n)
    a_p = jnp.zeros((np_, np_), jnp.bfloat16).at[:n, :n].set(a_hat.astype(jnp.bfloat16))
    x_p = jnp.zeros((np_, inp), jnp.bfloat16).at[:n, :in_ch].set(x.astype(jnp.bfloat16))
    w1_p = jnp.zeros((inp, midp), jnp.bfloat16).at[:in_ch, :mid].set(
        params["w1"].astype(jnp.bfloat16))
    b1_p = jnp.zeros((1, midp), jnp.float32).at[:, :mid].set(params["b1"])

    wcat = jnp.concatenate([params["w_mu"], params["w_lv"]], axis=1)      # (mid, 2*out)
    bcat = jnp.concatenate([params["b_mu"], params["b_lv"]], axis=1)      # (1, 2*out)
    wcat_p = jnp.zeros((midp, headp), jnp.bfloat16).at[:mid, :2 * out_ch].set(
        wcat.astype(jnp.bfloat16))
    bcat_p = jnp.zeros((1, headp), jnp.float32).at[:, :2 * out_ch].set(bcat)

    # ---- dropout keep-mask, values {0, 1/(1-p)} (RNG stream differs from torch) ----
    keep = jax.random.bernoulli(dropout_rng, 1.0 - DROP_P, (np_, midp))
    mask = keep.astype(jnp.float32) * (1.0 / (1.0 - DROP_P))

    f4, b2 = 4, 2
    # ---------------- stage 1: HW = relu(drop(A @ (X@W1) + b1)) @ Wcat ----------------
    s1_flops = 2 * tiles * np_ * inp * midp + 2 * np_ * np_ * midp + 2 * np_ * midp * headp
    s1_bytes = (np_ * np_ * b2 + np_ * inp * b2 + inp * midp * b2 + midp * f4
                + np_ * midp * f4 + midp * headp * b2 + np_ * headp * b2)
    hw = pl.pallas_call(
        _gcn_stage1_kernel,
        out_shape=jax.ShapeDtypeStruct((np_, headp), jnp.bfloat16),
        grid=(tiles,),
        in_specs=[
            pl.BlockSpec((tn, np_), lambda i: (i, 0)),        # A_hat row-tile
            pl.BlockSpec((np_, inp), lambda i: (0, 0)),       # X (resident)
            pl.BlockSpec((inp, midp), lambda i: (0, 0)),      # W1
            pl.BlockSpec((1, midp), lambda i: (0, 0)),        # b1
            pl.BlockSpec((tn, midp), lambda i: (i, 0)),       # dropout mask row-tile
            pl.BlockSpec((midp, headp), lambda i: (0, 0)),    # [W_mu|W_lv]
        ],
        out_specs=pl.BlockSpec((tn, headp), lambda i: (i, 0)),
        compiler_params=pltpu.CompilerParams(
            dimension_semantics=("parallel",),
            vmem_limit_bytes=_vmem_limit_bytes(
                tn * np_ * b2, np_ * inp * b2, inp * midp * b2, midp * f4,
                tn * midp * f4, midp * headp * b2, tn * headp * b2)),
        cost_estimate=pl.CostEstimate(flops=int(s1_flops), transcendentals=0,
                                      bytes_accessed=int(s1_bytes)),
    )(a_p, x_p, w1_p, b1_p, mask, wcat_p)

    # ---------------- stage 2: OUT = A @ HW + [b_mu|b_lv]  (one lane-dense slab) ------
    s2_flops = 2 * np_ * np_ * headp
    s2_bytes = np_ * np_ * b2 + np_ * headp * b2 + headp * f4 + np_ * headp * f4
    out = pl.pallas_call(
        _gcn_stage2_kernel,
        out_shape=jax.ShapeDtypeStruct((np_, headp), jnp.float32),
        grid=(tiles,),
        in_specs=[
            pl.BlockSpec((tn, np_), lambda i: (i, 0)),        # A_hat row-tile
            pl.BlockSpec((np_, headp), lambda i: (0, 0)),     # HW (resident)
            pl.BlockSpec((1, headp), lambda i: (0, 0)),       # [b_mu|b_lv]
        ],
        out_specs=pl.BlockSpec((tn, headp), lambda i: (i, 0)),
        compiler_params=pltpu.CompilerParams(
            dimension_semantics=("parallel",),
            vmem_limit_bytes=_vmem_limit_bytes(
                tn * np_ * b2, np_ * headp * b2, headp * f4, tn * headp * f4)),
        cost_estimate=pl.CostEstimate(flops=int(s2_flops), transcendentals=0,
                                      bytes_accessed=int(s2_bytes)),
    )(a_p, hw, bcat_p)

    mu = out[:n, :out_ch]
    logvar = out[:n, out_ch:2 * out_ch]
    return mu, logvar


if __name__ == "__main__":
    key = jax.random.PRNGKey(0)
    k_x, k_e, k_p, k_d = jax.random.split(key, 4)

    N = 16            # number of graph nodes
    IN_CH = 16        # In_channels
    OUT_CH = 8        # Out_channels -> Mid_channels = min(12, 16) = 12
    E = 40            # number of edges

    x = jax.random.normal(k_x, (N, IN_CH), dtype=jnp.float32)
    edge_index = jax.random.randint(k_e, (2, E), 0, N, dtype=jnp.int32)

    params, mid = init_vgae_params(k_p, IN_CH, OUT_CH)

    mu, logvar = vgae_encoder_forward(params, x, edge_index, dropout_rng=k_d)
    jax.block_until_ready((mu, logvar))

    assert mu.shape == (N, OUT_CH) and logvar.shape == (N, OUT_CH)
    assert jnp.all(jnp.isfinite(mu)) and jnp.all(jnp.isfinite(logvar))
    print("KERNEL_OK")
</pallas_src>

<mosaic_0001>
module attributes {stable_mosaic.version = 11 : i64} {
  func.func @_gcn_stage1_kernel(%arg0: i32, %arg1: memref<16x16xbf16, #tpu.memory_space<vmem>>, %arg2: memref<16x128xbf16, #tpu.memory_space<vmem>>, %arg3: memref<128x128xbf16, #tpu.memory_space<vmem>>, %arg4: memref<1x128xf32, #tpu.memory_space<vmem>>, %arg5: memref<16x128xf32, #tpu.memory_space<vmem>>, %arg6: memref<128x128xbf16, #tpu.memory_space<vmem>>, %arg7: memref<16x128xbf16, #tpu.memory_space<vmem>>) attributes {dimension_semantics = [#tpu.dimension_semantics<parallel>], iteration_bounds = array<i64: 1>, scalar_prefetch = 0 : i64, scratch_operands = 0 : i64, tpu.core_type = #tpu.core_type<tc>, window_params = [{transform_indices = @transform_0, window_bounds = array<i64: 16, 16>}, {pipeline_mode = #tpu.pipeline_mode<synchronous>, transform_indices = @transform_1, window_bounds = array<i64: 16, 128>}, {pipeline_mode = #tpu.pipeline_mode<synchronous>, transform_indices = @transform_2, window_bounds = array<i64: 128, 128>}, {pipeline_mode = #tpu.pipeline_mode<synchronous>, transform_indices = @transform_3, window_bounds = array<i64: 1, 128>}, {transform_indices = @transform_4, window_bounds = array<i64: 16, 128>}, {pipeline_mode = #tpu.pipeline_mode<synchronous>, transform_indices = @transform_5, window_bounds = array<i64: 128, 128>}, {transform_indices = @transform_6, window_bounds = array<i64: 16, 128>}]} {
    %c0 = arith.constant 0 : index
    %c0_0 = arith.constant 0 : index
    %0 = vector.load %arg2[%c0, %c0_0] : memref<16x128xbf16, #tpu.memory_space<vmem>>, vector<16x128xbf16>
    %c0_1 = arith.constant 0 : index
    %c0_2 = arith.constant 0 : index
    %1 = vector.load %arg3[%c0_1, %c0_2] : memref<128x128xbf16, #tpu.memory_space<vmem>>, vector<128x128xbf16>
    %cst = arith.constant dense<0.000000e+00> : vector<16x128xf32>
    %2 = tpu.matmul %0, %1, %cst {dimension_numbers = #tpu.dot_dimension_numbers<[1], [0], [0], [1], [0, 0, 1, 1], [], []>} : vector<16x128xbf16>, vector<128x128xbf16>, vector<16x128xf32> -> vector<16x128xf32>
    %c0_3 = arith.constant 0 : index
    %c0_4 = arith.constant 0 : index
    %3 = vector.load %arg1[%c0_3, %c0_4] : memref<16x16xbf16, #tpu.memory_space<vmem>>, vector<16x16xbf16>
    %4 = arith.truncf %2 : vector<16x128xf32> to vector<16x128xbf16>
    %cst_5 = arith.constant dense<0.000000e+00> : vector<16x128xf32>
    %5 = tpu.matmul %3, %4, %cst_5 {dimension_numbers = #tpu.dot_dimension_numbers<[1], [0], [0], [1], [0, 0, 1, 1], [], []>} : vector<16x16xbf16>, vector<16x128xbf16>, vector<16x128xf32> -> vector<16x128xf32>
    %c0_6 = arith.constant 0 : index
    %c0_7 = arith.constant 0 : index
    %6 = vector.load %arg4[%c0_6, %c0_7] : memref<1x128xf32, #tpu.memory_space<vmem>>, vector<1x128xf32>
    %7 = vector.broadcast %6 : vector<1x128xf32> to vector<16x128xf32>
    %8 = arith.addf %5, %7 : vector<16x128xf32>
    %c0_8 = arith.constant 0 : index
    %c0_9 = arith.constant 0 : index
    %9 = vector.load %arg5[%c0_8, %c0_9] : memref<16x128xf32, #tpu.memory_space<vmem>>, vector<16x128xf32>
    %10 = arith.mulf %8, %9 : vector<16x128xf32>
    %cst_10 = arith.constant 0.000000e+00 : f32
    %11 = vector.broadcast %cst_10 : f32 to vector<16x128xf32>
    %12 = arith.maximumf %10, %11 : vector<16x128xf32>
    %13 = arith.truncf %12 : vector<16x128xf32> to vector<16x128xbf16>
    %c0_11 = arith.constant 0 : index
    %c0_12 = arith.constant 0 : index
    %14 = vector.load %arg6[%c0_11, %c0_12] : memref<128x128xbf16, #tpu.memory_space<vmem>>, vector<128x128xbf16>
    %cst_13 = arith.constant dense<0.000000e+00> : vector<16x128xf32>
    %15 = tpu.matmul %13, %14, %cst_13 {dimension_numbers = #tpu.dot_dimension_numbers<[1], [0], [0], [1], [0, 0, 1, 1], [], []>} : vector<16x128xbf16>, vector<128x128xbf16>, vector<16x128xf32> -> vector<16x128xf32>
    %16 = arith.truncf %15 : vector<16x128xf32> to vector<16x128xbf16>
    %c0_14 = arith.constant 0 : index
    %c0_15 = arith.constant 0 : index
    %17 = vector.load %arg7[%c0_14, %c0_15] : memref<16x128xbf16, #tpu.memory_space<vmem>>, vector<16x128xbf16>
    tpu.vector_store %arg7[%c0_14, %c0_15], %16 {strides = array<i32>} : memref<16x128xbf16, #tpu.memory_space<vmem>>, vector<16x128xbf16>,
    return
  }
  func.func @transform_0(%arg0: i32) -> (i32, i32) {
    %c0_i32 = arith.constant 0 : i32
    %c0_i32_0 = arith.constant 0 : i32
    return %arg0, %c0_i32 : i32, i32
  }
  func.func @transform_1(%arg0: i32) -> (i32, i32) {
    %c0_i32 = arith.constant 0 : i32
    %c0_i32_0 = arith.constant 0 : i32
    %c0_i32_1 = arith.constant 0 : i32
    return %c0_i32, %c0_i32_0 : i32, i32
  }
  func.func @transform_2(%arg0: i32) -> (i32, i32) {
    %c0_i32 = arith.constant 0 : i32
    %c0_i32_0 = arith.constant 0 : i32
    %c0_i32_1 = arith.constant 0 : i32
    return %c0_i32, %c0_i32_0 : i32, i32
  }
  func.func @transform_3(%arg0: i32) -> (i32, i32) {
    %c0_i32 = arith.constant 0 : i32
    %c0_i32_0 = arith.constant 0 : i32
    %c0_i32_1 = arith.constant 0 : i32
    return %c0_i32, %c0_i32_0 : i32, i32
  }
  func.func @transform_4(%arg0: i32) -> (i32, i32) {
    %c0_i32 = arith.constant 0 : i32
    %c0_i32_0 = arith.constant 0 : i32
    return %arg0, %c0_i32 : i32, i32
  }
  func.func @transform_5(%arg0: i32) -> (i32, i32) {
    %c0_i32 = arith.constant 0 : i32
    %c0_i32_0 = arith.constant 0 : i32
    %c0_i32_1 = arith.constant 0 : i32
    return %c0_i32, %c0_i32_0 : i32, i32
  }
  func.func @transform_6(%arg0: i32) -> (i32, i32) {
    %c0_i32 = arith.constant 0 : i32
    %c0_i32_0 = arith.constant 0 : i32
    return %arg0, %c0_i32 : i32, i32
  }
}

</mosaic_0001>

<bundles_post_ra>
// kernel: tpu_custom_call.1
= control target key start
LH: loop header
LB: loop body
LE: loop exit
PB: predicated region body
PF: predicated region fallthrough
CT: control target
= control target key end

     0   :  { %11 = vsyncpa [#allocation3], 0  ;;  %s669_s0 = inlined_call_operand.hbm [shape: bf16[16,16], index: 0, kind: input, shape index: {}]   ;;  %s670_s1 = inlined_call_operand.hbm [shape: bf16[16,128], index: 1, kind: input, shape index: {}]   ;;  %s671_s2 = inlined_call_operand.hbm [shape: bf16[128,128], index: 2, kind: input, shape index: {}]   ;;  %s672_s3 = inlined_call_operand.vmem [shape: f32[1,128], index: 3, kind: input, shape index: {}]   ;;  %s673_s4 = inlined_call_operand.hbm [shape: f32[16,128], index: 4, kind: input, shape index: {}]   ;;  %s674_s5 = inlined_call_operand.hbm [shape: bf16[128,128], index: 5, kind: input, shape index: {}]   ;;  %s675_s6 = inlined_call_operand.hbm [shape: bf16[16,128], index: 6, kind: output, shape index: {}]  }
   0x1   :  { %12 = vsyncpa [#allocation6], 0 }
   0x2   :  { %13 = vsyncpa [#allocation9], 0 }
   0x3   :  { %14 = vsyncpa [#allocation4], 0  ;;  %s32_s23 = sshll.u32 %s670_s1, 4  ;;  %s588_s24 = smov [#allocation5]   ;;  %s33_s23 = int_to_ptr.hbm [resolvable:$true] %s32_s23 }
   0x4   :  { %s34_s25 = sshll.u32 %s588_s24, 4  ;;  %s60_s28 = sshll.u32 %s673_s4, 4  ;;  %s35_s25 = int_to_ptr.vmem [resolvable:$true] %s34_s25  ;;  %s61_s28 = int_to_ptr.hbm [resolvable:$true] %s60_s28 }
   0x5   :  { %s589_s29 = smov 64   ;;  %s590_s30 = smov 4  }
   0x6   :  { %40 = dma.hbm_to_vmem [thread:$0]  %s33_s23, 128, %s35_s25, [#allocation6], %s589_s29, %s589_s29, %s590_s30  }
   0x7   :  { %s591_s7 = smov [#allocation8]   ;;  %s592_s9 = smov 128  }
   0x8   :  { %s62_s8 = sshll.u32 %s591_s7, 4  ;;  %s593_s1 = smov 8   ;;  %s63_s8 = int_to_ptr.vmem [resolvable:$true] %s62_s8 }
   0x9   :  { %68 = dma.hbm_to_vmem [thread:$0]  %s61_s28, 256, %s63_s8, [#allocation9], %s592_s9, %s592_s9, %s593_s1  }
   0xa   :  { %s19_s12 = sshll.u32 %s669_s0, 4  ;;  %s594_s13 = smov [#allocation2]   ;;  %s20_s12 = int_to_ptr.hbm [resolvable:$true] %s19_s12 }
   0xb   :  { %s21_s4 = sshll.u32 %s594_s13, 4  ;;  %s45_s16 = sshll.u32 %s671_s2, 4  ;;  %s22_s4 = int_to_ptr.vmem [resolvable:$true] %s21_s4  ;;  %s46_s16 = int_to_ptr.hbm [resolvable:$true] %s45_s16 }
   0xc   :  { %27 = dma.hbm_to_vmem [thread:$0]  %s20_s12, 128, %s22_s4, [#allocation3], %s589_s29, %s589_s29, %s590_s30  }
   0xd   :  { %s595_s17 = smov [#allocation7]   ;;  %s73_s21 = sshll.u32 %s674_s5, 4  ;;  %s74_s21 = int_to_ptr.hbm [resolvable:$true] %s73_s21 }
   0xe   :  { %s47_s18 = sshll.u32 %s595_s17, 4  ;;  %s596_s0 = smov [#allocation10]   ;;  %s48_s18 = int_to_ptr.vmem [resolvable:$true] %s47_s18 }
   0xf   :  { %53 = dma.hbm_to_vmem [thread:$0]  %s46_s16, 1024, %s48_s18, [#allocation6], %s589_s29, %s589_s29, %s590_s30  }
  0x10   :  { %s75_s22 = sshll.u32 %s596_s0, 4  ;;  %s76_s22 = int_to_ptr.vmem [resolvable:$true] %s75_s22 }
  0x11   :  { %81 = dma.hbm_to_vmem [thread:$0]  %s74_s21, 1024, %s76_s22, [#allocation9], %s589_s29, %s589_s29, %s590_s30  }
  0x12   :  { %580 = dma.done.wait [#allocation3], 128  }
  0x13   :  { %581 = vsyncadd [#allocation3], 4294967168 }
  0x14   :  { %582 = dma.done.wait [#allocation6], 1152  }
  0x15   :  { %583 = vsyncadd [#allocation6], 4294966144 }
  0x16   :  { %584 = dma.done.wait [#allocation9], 1280  }
  0x17   :  { %585 = vsyncadd [#allocation9], 4294966016  ;;  %v410_v0 = vld [vmem:[#allocation7 + $0x38] sm:$0xff]  ;;  %v409_v1 = vld [vmem:[#allocation7 + $0x30] sm:$0xff]  ;;  %vm201_vm0 = vcmask 130048   ;;  %s597_s23 = smov [#allocation11]  }
  0x18   :  { %175 = vmatpush.bf16.msra.mxu0 %v410_v0  ;;  %v408_v2 = vld [vmem:[#allocation7 + $0x28] sm:$0xff]  ;;  %v407_v3 = vld [vmem:[#allocation7 + $0x20] sm:$0xff]  ;;  %v406_v4 = vld [vmem:[#allocation7 + $0x18] sm:$0xff]  ;;  %s312_s24 = sshll.u32 %s597_s23, 4  ;;  %s314_s27 = sshll.u32 %s675_s6, 4  ;;  %s313_s24 = int_to_ptr.vmem [resolvable:$true] %s312_s24  ;;  %s315_s27 = int_to_ptr.hbm [resolvable:$true] %s314_s27 }
  0x19   :  { %v405_v5 = vld [vmem:[#allocation7 + $0x10] sm:$0xff]  ;;  %v404_v6 = vld [vmem:[#allocation7 + $0x8] sm:$0xff]  ;;  %v403_v7 = vld [vmem:[#allocation7] sm:$0xff] }
  0x1a   :  { %v402_v8 = vld [vmem:[#allocation5] sm:$0xff]  ;;  %v419_v9 = vld [vmem:[#allocation10 + $0x38] sm:$0xff]  ;;  %v418_v10 = vld [vmem:[#allocation10 + $0x30] sm:$0xff] }
  0x1b   :  { %290 = vmatpush.bf16.msra.mxu2 %v419_v9  ;;  %v417_v11 = vld [vmem:[#allocation10 + $0x28] sm:$0xff]  ;;  %v416_v12 = vld [vmem:[#allocation10 + $0x20] sm:$0xff]  ;;  %v415_v17 = vld [vmem:[#allocation10 + $0x18] sm:$0xff] }
  0x1c   :  { %176 = vmatpush.bf16.msra.mxu0 %v409_v1  ;;  %v411_v16 = vld [vmem:[#allocation2] sm:$0xff]  ;;  %v414_v18 = vld [vmem:[#allocation10 + $0x10] sm:$0xff]  ;;  %v413_v19 = vld [vmem:[#allocation10 + $0x8] sm:$0xff] }
  0x1d   :  { %v412_v20 = vld [vmem:[#allocation10] sm:$0xff]  ;;  %v219_v24 = vld [vmem:[#allocation8] sm:$0xff]  ;;  %v220_v26 = vld [vmem:[#allocation8 + $0x8] sm:$0xff] }
  0x1e   :  { %v435_v22 = vld [vmem:[%s672_s3] ss:$0 sm:$0xff] }
  0x1f   :  { %291 = vmatpush.bf16.msra.mxu2 %v418_v10 }
  0x20   :  { %177 = vmatpush.bf16.msra.mxu0 %v408_v2 }
  0x23   :  { %292 = vmatpush.bf16.msra.mxu2 %v417_v11 }
  0x24   :  { %178 = vmatpush.bf16.msra.mxu0 %v407_v3 }
  0x27   :  { %293 = vmatpush.bf16.msra.mxu2 %v416_v12 }
  0x28   :  { %179 = vmatpush.bf16.msra.mxu0 %v406_v4 }
  0x2b   :  { %294 = vmatpush.bf16.msra.mxu2 %v415_v17 }
  0x2c   :  { %180 = vmatpush.bf16.msra.mxu0 %v405_v5 }
  0x2f   :  { %295 = vmatpush.bf16.msra.mxu2 %v414_v18 }
  0x30   :  { %181 = vmatpush.bf16.msra.mxu0 %v404_v6 }
  0x33   :  { %296 = vmatpush.bf16.msra.mxu2 %v413_v19 }
  0x34   :  { %182 = vmatpush.bf16.msra.mxu0 %v403_v7 }
  0x37   :  { %183 = vmatmul.bf16.vlgmr.msra.gmra.mxu0 %v402_v8  ;;  %297 = vmatpush.bf16.msra.mxu2 %v412_v20 }
  0xb4   :  { %v184_v13 = vpop.f32.mrf.mxu0 }
  0xbc   :  { %v186_v14 = vpop.f32.mrf.mxu0 }
  0xbd   :  { %v191_v15 = vpack.c.bf16 %v186_v14, %v184_v13 }
  0xbf   :  { %212 = vmatpush.bf16.msra.mxu1 %v191_v15 }
  0xc2   :  { %369 = vmatmul.msk.bf16.vlgmr.msra.gmra.mxu1 %vm201_vm0, %v411_v16 }
 0x13f   :  { %v214_v21 = vpop.f32.mrf.mxu1 }
 0x140   :  { %v215_v23 = vadd.f32 %v435_v22, %v214_v21 }
 0x142   :  { %v221_v27 = vmul.f32 %v219_v24, %v215_v23 }
 0x144   :  { %v223_v30 = vmax.f32 %v221_v27, 0.0 }
 0x147   :  { %v216_v25 = vpop.f32.mrf.mxu1 }
 0x148   :  { %v217_v28 = vadd.f32 %v435_v22, %v216_v25 }
 0x14a   :  { %v222_v29 = vmul.f32 %v220_v26, %v217_v28 }
 0x14c   :  { %v224_v31 = vmax.f32 %v222_v29, 0.0 }
 0x14e   :  { %v225_v32 = vpack.c.bf16 %v224_v31, %v223_v30 }
 0x150   :  { %298 = vmatmul.bf16.vlgmr.msra.gmra.mxu2 %v225_v32 }
 0x1d3   :  { %v299_v33 = vpop.f32.mrf.mxu2 }
 0x1db   :  { %v301_v34 = vpop.f32.mrf.mxu2 }
 0x1dc   :  { %v423_v35 = vpack.c.bf16 %v301_v34, %v299_v33 }
 0x1de   :  { %424 = vst [vmem:[#allocation11] sm:$0xff] %v423_v35  }
 0x1df   :  { %320 = dma.vmem_to_hbm [thread:$0]  %s313_s24, 128, %s315_s27, [#allocation4], %s589_s29, %s589_s29, %s590_s30  }
 0x1e0   :  { %586 = dma.done.wait [#allocation4], 128  }
 0x1e1   :  { %587 = vsyncadd [#allocation4], 4294967168 }
 0x1e2   :  { %325 = vsyncpa [#allocation3], 1 }
 0x1e3   :  { %326 = vsyncpa [#allocation6], 1 }
 0x1e4   :  { %327 = vsyncpa [#allocation9], 1 }
 0x1e5   :  { %328 = vsyncpa [#allocation4], 1 }

</bundles_post_ra>
